<compile_context>
chip_gen: v7x
topology: tpu7x:2x2x1
jax: 0.10.0
libtpu: 0.0.40
codegen_flags: <defaults>
</compile_context>

<pallas_src>
import math
import functools

import jax
import jax.numpy as jnp
from jax.experimental import pallas as pl
from jax.experimental.pallas import tpu as pltpu


# ----------------------------------------------------------------------------
# Shared attention core (operates on already-projected q, k, v for one batch
# element). q: (Sq, D) f32, k/v: (Sk, D) f32, mask: (Sq, Sk) f32 or None.
# ----------------------------------------------------------------------------
def _attention_core(num_heads, d_k, scale, q, k, v, mask, wo_ref, bo_ref):
    sq, d_model = q.shape
    sk = k.shape[0]

    def to_heads(t, s):
        # (s, D) f32 -> (H, s, d_k) bf16; relayout done in f32, cast last.
        t = jnp.transpose(t.reshape(s, num_heads, d_k), (1, 0, 2))
        return t.astype(jnp.bfloat16)

    qh = to_heads(q, sq)
    kh = to_heads(k, sk)
    vh = to_heads(v, sk)

    # Batched Q @ K^T over all heads in one contraction (no per-head unroll).
    scores = jnp.einsum("hqd,hkd->hqk", qh, kh,
                        preferred_element_type=jnp.float32) * scale  # (H,Sq,Sk)

    if mask is not None:
        # Compare computed ONCE, broadcast across heads (masked_fill semantics).
        valid = mask != 0.0                                   # (Sq, Sk) bool
        scores = jnp.where(valid[None], scores, -1e10)
        # TODO(synk): rows with every key masked degrade to a uniform softmax
        # over padding (same as the PyTorch reference); add a guard if fully
        # padded rows can occur.

    # Softmax (f32 statistics), denominator reciprocal on the EUP.
    scores = scores - jnp.max(scores, axis=-1, keepdims=True)
    p = jnp.exp(scores)
    p = p * pl.reciprocal(jnp.sum(p, axis=-1, keepdims=True), approx=True)

    # Batched P @ V over all heads, context written back in (Sq, D) layout.
    ctx = jnp.einsum("hqk,hkd->hqd", p.astype(jnp.bfloat16), vh,
                     preferred_element_type=jnp.float32)      # (H, Sq, d_k)
    ctx = jnp.transpose(ctx, (1, 0, 2)).reshape(sq, d_model)  # (Sq, D)

    out = jnp.dot(ctx.astype(jnp.bfloat16),
                  wo_ref[...].astype(jnp.bfloat16),
                  preferred_element_type=jnp.float32) + bo_ref[...]
    return out


# ----------------------------------------------------------------------------
# Self-attention kernel (query is key is value): fused QKV projection.
# ----------------------------------------------------------------------------
def _mha_self_kernel(num_heads, d_k, scale, has_mask, *refs):
    if has_mask:
        x_ref, mask_ref, wqkv_ref, bqkv_ref, wo_ref, bo_ref, o_ref = refs
        mask = mask_ref[0]
    else:
        x_ref, wqkv_ref, bqkv_ref, wo_ref, bo_ref, o_ref = refs
        mask = None

    x = x_ref[0]                                  # (S, D)
    d_model = x.shape[-1]

    # Single MXU pass with N = 3D instead of three N = D passes.
    qkv = jnp.dot(x.astype(jnp.bfloat16),
                  wqkv_ref[...].astype(jnp.bfloat16),
                  preferred_element_type=jnp.float32) + bqkv_ref[...]  # (S, 3D)
    q = qkv[:, :d_model]
    k = qkv[:, d_model:2 * d_model]
    v = qkv[:, 2 * d_model:]

    out = _attention_core(num_heads, d_k, scale, q, k, v, mask, wo_ref, bo_ref)
    o_ref[0] = out.astype(o_ref.dtype)


# ----------------------------------------------------------------------------
# General (cross-attention) kernel: separate query / key / value inputs.
# ----------------------------------------------------------------------------
def _mha_cross_kernel(num_heads, d_k, scale, has_mask, *refs):
    if has_mask:
        (q_ref, k_ref, v_ref, mask_ref,
         wqkv_ref, bqkv_ref, wo_ref, bo_ref, o_ref) = refs
        mask = mask_ref[0]
    else:
        q_ref, k_ref, v_ref, wqkv_ref, bqkv_ref, wo_ref, bo_ref, o_ref = refs
        mask = None

    d_model = q_ref.shape[-1]
    wqkv = wqkv_ref[...]                          # (D, 3D) f32, one resident slab
    bqkv = bqkv_ref[...]                          # (1, 3D)

    def proj(x, lo, hi):
        return jnp.dot(x.astype(jnp.bfloat16),
                       wqkv[:, lo:hi].astype(jnp.bfloat16),
                       preferred_element_type=jnp.float32) + bqkv[:, lo:hi]

    q = proj(q_ref[0], 0, d_model)
    k = proj(k_ref[0], d_model, 2 * d_model)
    v = proj(v_ref[0], 2 * d_model, 3 * d_model)

    out = _attention_core(num_heads, d_k, scale, q, k, v, mask, wo_ref, bo_ref)
    o_ref[0] = out.astype(o_ref.dtype)


# ----------------------------------------------------------------------------
# Wrapper: grid over batch, one program per (S, D) slab.
# ----------------------------------------------------------------------------
def multi_head_attention(params, query, key, value, mask=None):
    num_heads = params["num_heads"]
    B, sq, d_model = query.shape
    sk = key.shape[1]
    assert d_model % num_heads == 0, "d_model must be divisible by num_heads"
    d_k = d_model // num_heads
    scale = 1.0 / math.sqrt(d_k)

    self_attn = (query is key) and (key is value)
    has_mask = mask is not None

    def full_spec(shape):
        return pl.BlockSpec(shape, lambda b: (0,) * len(shape))

    inputs = []
    in_specs = []
    if self_attn:
        kernel = functools.partial(_mha_self_kernel, num_heads, d_k, scale, has_mask)
        inputs.append(query)
        in_specs.append(pl.BlockSpec((1, sq, d_model), lambda b: (b, 0, 0)))
    else:
        kernel = functools.partial(_mha_cross_kernel, num_heads, d_k, scale, has_mask)
        inputs += [query, key, value]
        in_specs += [pl.BlockSpec((1, sq, d_model), lambda b: (b, 0, 0)),
                     pl.BlockSpec((1, sk, d_model), lambda b: (b, 0, 0)),
                     pl.BlockSpec((1, sk, d_model), lambda b: (b, 0, 0))]

    if has_mask:
        # Normalize any broadcastable mask to a (B, Sq, Sk) slab (head dim dropped).
        mask_bss = jnp.broadcast_to(mask, (B, 1, sq, sk)).reshape(B, sq, sk)
        mask_bss = mask_bss.astype(jnp.float32)
        inputs.append(mask_bss)
        in_specs.append(pl.BlockSpec((1, sq, sk), lambda b: (b, 0, 0)))

    inputs += [params["wqkv"], params["bqkv"], params["wo"], params["bo"]]
    in_specs += [full_spec((d_model, 3 * d_model)), full_spec((1, 3 * d_model)),
                 full_spec((d_model, d_model)), full_spec((1, d_model))]

    return pl.pallas_call(
        kernel,
        out_shape=jax.ShapeDtypeStruct((B, sq, d_model), jnp.float32),
        grid_spec=pltpu.PrefetchScalarGridSpec(
            num_scalar_prefetch=0,
            grid=(B,),
            in_specs=in_specs,
            out_specs=pl.BlockSpec((1, sq, d_model), lambda b: (b, 0, 0)),
        ),
        compiler_params=pltpu.CompilerParams(
            dimension_semantics=("parallel",),        # megacore sharding on v7x
            vmem_limit_bytes=48 * 1024 * 1024,        # above the 32 MiB scoped default
        ),
    )(*inputs)


# ----------------------------------------------------------------------------
# Pure-JAX reference (matches the PyTorch module) + parameter init.
# ----------------------------------------------------------------------------
def mha_reference(params, query, key, value, mask=None):
    num_heads = params["num_heads"]
    B, sq, d_model = query.shape
    sk = key.shape[1]
    d_k = d_model // num_heads
    wqkv, bqkv = params["wqkv"], params["bqkv"]

    q = query @ wqkv[:, :d_model] + bqkv[:, :d_model]
    k = key @ wqkv[:, d_model:2 * d_model] + bqkv[:, d_model:2 * d_model]
    v = value @ wqkv[:, 2 * d_model:] + bqkv[:, 2 * d_model:]

    def split(t):
        b, s, _ = t.shape
        return jnp.transpose(t.reshape(b, s, num_heads, d_k), (0, 2, 1, 3))

    qh, kh, vh = split(q), split(k), split(v)                 # (B, H, S, d_k)
    scores = jnp.einsum("bhqd,bhkd->bhqk", qh, kh) / math.sqrt(d_k)
    if mask is not None:
        scores = jnp.where(mask == 0, -1e10, scores)
    p = jax.nn.softmax(scores, axis=-1)
    ctx = jnp.einsum("bhqk,bhkd->bhqd", p, vh)
    ctx = jnp.transpose(ctx, (0, 2, 1, 3)).reshape(B, sq, d_model)
    return ctx @ params["wo"] + params["bo"]


def init_params(key, d_model, num_heads):
    assert d_model % num_heads == 0
    ks = jax.random.split(key, 8)
    s = 1.0 / math.sqrt(d_model)

    def lin(kw, kb, n_in, n_out):
        w = jax.random.uniform(kw, (n_in, n_out), jnp.float32, -s, s)
        b = jax.random.uniform(kb, (1, n_out), jnp.float32, -s, s)
        return w, b

    wq, bq = lin(ks[0], ks[1], d_model, d_model)
    wk, bk = lin(ks[2], ks[3], d_model, d_model)
    wv, bv = lin(ks[4], ks[5], d_model, d_model)
    wo, bo = lin(ks[6], ks[7], d_model, d_model)
    return dict(
        num_heads=num_heads,
        wqkv=jnp.concatenate([wq, wk, wv], axis=1),   # fused (D, 3D) QKV weight
        bqkv=jnp.concatenate([bq, bk, bv], axis=1),   # fused (1, 3D) QKV bias
        wo=wo,
        bo=bo,
    )


# ----------------------------------------------------------------------------
if __name__ == "__main__":
    d_model = 32
    num_heads = 4
    B, S = 2, 8

    key = jax.random.PRNGKey(0)
    k_x, k_mem, k_param = jax.random.split(key, 3)

    params = init_params(k_param, d_model, num_heads)
    x = jax.random.normal(k_x, (B, S, d_model), jnp.float32)

    # Padding-style mask: batch item 1 has its last 2 key positions masked out.
    lengths = jnp.array([S, S - 2])
    key_pos = jnp.arange(S)
    pad = (key_pos[None, :] < lengths[:, None]).astype(jnp.float32)   # (B, S)
    mask = jnp.broadcast_to(pad[:, None, None, :], (B, 1, S, S))      # (B,1,S,S)

    # --- self-attention with mask (fused-QKV kernel path) -----------------
    out_self = jax.block_until_ready(multi_head_attention(params, x, x, x, mask))
    ref_self = mha_reference(params, x, x, x, mask)
    assert out_self.shape == (B, S, d_model)
    assert jnp.all(jnp.isfinite(out_self))
    err_self = float(jnp.max(jnp.abs(out_self - ref_self)))
    assert err_self < 5e-2, f"self-attention mismatch: {err_self}"

    # --- cross-attention without mask (general kernel path) ---------------
    mem = jax.random.normal(k_mem, (B, 16, d_model), jnp.float32)
    out_cross = jax.block_until_ready(multi_head_attention(params, x, mem, mem, None))
    ref_cross = mha_reference(params, x, mem, mem, None)
    assert out_cross.shape == (B, S, d_model)
    assert jnp.all(jnp.isfinite(out_cross))
    err_cross = float(jnp.max(jnp.abs(out_cross - ref_cross)))
    assert err_cross < 5e-2, f"cross-attention mismatch: {err_cross}"

    print("KERNEL_OK")
</pallas_src>

<mosaic_0001>
module attributes {stable_mosaic.version = 11 : i64} {
  func.func @_mha_self_kernel(%arg0: i32, %arg1: memref<1x8x32xf32, #tpu.memory_space<vmem>>, %arg2: memref<1x8x8xf32, #tpu.memory_space<vmem>>, %arg3: memref<32x96xf32, #tpu.memory_space<vmem>>, %arg4: memref<1x96xf32, #tpu.memory_space<vmem>>, %arg5: memref<32x32xf32, #tpu.memory_space<vmem>>, %arg6: memref<1x32xf32, #tpu.memory_space<vmem>>, %arg7: memref<1x8x32xf32, #tpu.memory_space<vmem>>) attributes {dimension_semantics = [#tpu.dimension_semantics<parallel>], iteration_bounds = array<i64: 2>, scalar_prefetch = 0 : i64, scratch_operands = 0 : i64, tpu.core_type = #tpu.core_type<tc>, window_params = [{transform_indices = @transform_0, window_bounds = array<i64: 1, 8, 32>}, {transform_indices = @transform_1, window_bounds = array<i64: 1, 8, 8>}, {pipeline_mode = #tpu.pipeline_mode<synchronous>, transform_indices = @transform_2, window_bounds = array<i64: 32, 96>}, {pipeline_mode = #tpu.pipeline_mode<synchronous>, transform_indices = @transform_3, window_bounds = array<i64: 1, 96>}, {pipeline_mode = #tpu.pipeline_mode<synchronous>, transform_indices = @transform_4, window_bounds = array<i64: 32, 32>}, {pipeline_mode = #tpu.pipeline_mode<synchronous>, transform_indices = @transform_5, window_bounds = array<i64: 1, 32>}, {transform_indices = @transform_6, window_bounds = array<i64: 1, 8, 32>}]} {
    %c0 = arith.constant 0 : index
    %c0_0 = arith.constant 0 : index
    %c0_1 = arith.constant 0 : index
    %0 = vector.load %arg2[%c0, %c0_0, %c0_1] : memref<1x8x8xf32, #tpu.memory_space<vmem>>, vector<1x8x8xf32>
    %1 = vector.shape_cast %0 : vector<1x8x8xf32> to vector<8x8xf32>
    %c0_2 = arith.constant 0 : index
    %c0_3 = arith.constant 0 : index
    %c0_4 = arith.constant 0 : index
    %2 = vector.load %arg1[%c0_2, %c0_3, %c0_4] : memref<1x8x32xf32, #tpu.memory_space<vmem>>, vector<1x8x32xf32>
    %3 = vector.shape_cast %2 : vector<1x8x32xf32> to vector<8x32xf32>
    %4 = arith.truncf %3 : vector<8x32xf32> to vector<8x32xbf16>
    %c0_5 = arith.constant 0 : index
    %c0_6 = arith.constant 0 : index
    %5 = vector.load %arg3[%c0_5, %c0_6] : memref<32x96xf32, #tpu.memory_space<vmem>>, vector<32x96xf32>
    %6 = arith.truncf %5 : vector<32x96xf32> to vector<32x96xbf16>
    %cst = arith.constant dense<0.000000e+00> : vector<8x96xf32>
    %7 = tpu.matmul %4, %6, %cst {dimension_numbers = #tpu.dot_dimension_numbers<[1], [0], [0], [1], [0, 0, 1, 1], [], []>} : vector<8x32xbf16>, vector<32x96xbf16>, vector<8x96xf32> -> vector<8x96xf32>
    %c0_7 = arith.constant 0 : index
    %c0_8 = arith.constant 0 : index
    %8 = vector.load %arg4[%c0_7, %c0_8] : memref<1x96xf32, #tpu.memory_space<vmem>>, vector<1x96xf32>
    %9 = vector.broadcast %8 : vector<1x96xf32> to vector<8x96xf32>
    %10 = arith.addf %7, %9 : vector<8x96xf32>
    %11 = vector.extract_strided_slice %10 {offsets = [0, 0], sizes = [8, 32], strides = [1, 1]} : vector<8x96xf32> to vector<8x32xf32>
    %12 = vector.extract_strided_slice %10 {offsets = [0, 32], sizes = [8, 32], strides = [1, 1]} : vector<8x96xf32> to vector<8x32xf32>
    %13 = vector.extract_strided_slice %10 {offsets = [0, 64], sizes = [8, 32], strides = [1, 1]} : vector<8x96xf32> to vector<8x32xf32>
    %14 = vector.shape_cast %11 : vector<8x32xf32> to vector<8x4x8xf32>
    %15 = tpu.transpose %14, [1, 0, 2] : vector<8x4x8xf32> -> vector<4x8x8xf32>
    %16 = arith.truncf %15 : vector<4x8x8xf32> to vector<4x8x8xbf16>
    %17 = vector.shape_cast %12 : vector<8x32xf32> to vector<8x4x8xf32>
    %18 = tpu.transpose %17, [1, 0, 2] : vector<8x4x8xf32> -> vector<4x8x8xf32>
    %19 = arith.truncf %18 : vector<4x8x8xf32> to vector<4x8x8xbf16>
    %20 = vector.shape_cast %13 : vector<8x32xf32> to vector<8x4x8xf32>
    %21 = tpu.transpose %20, [1, 0, 2] : vector<8x4x8xf32> -> vector<4x8x8xf32>
    %22 = arith.truncf %21 : vector<4x8x8xf32> to vector<4x8x8xbf16>
    "tpu.trace_start"() <{level = 10 : i32, message = "hqd,hkd->hqk"}> : () -> ()
    %cst_9 = arith.constant dense<0.000000e+00> : vector<4x8x8xf32>
    %23 = tpu.matmul %16, %19, %cst_9 {dimension_numbers = #tpu.dot_dimension_numbers<[2], [2], [1], [1], [0, 0, 0, 1, 1, 1], [0], [0]>} : vector<4x8x8xbf16>, vector<4x8x8xbf16>, vector<4x8x8xf32> -> vector<4x8x8xf32>
    "tpu.trace_stop"() : () -> ()
    %cst_10 = arith.constant 0.353553385 : f32
    %24 = vector.broadcast %cst_10 : f32 to vector<4x8x8xf32>
    %25 = arith.mulf %23, %24 : vector<4x8x8xf32>
    %cst_11 = arith.constant 0.000000e+00 : f32
    %26 = vector.broadcast %cst_11 : f32 to vector<8x8xf32>
    %27 = arith.cmpf one, %1, %26 : vector<8x8xf32>
    %28 = vector.shape_cast %27 : vector<8x8xi1> to vector<1x8x8xi1>
    %cst_12 = arith.constant -1.000000e+10 : f32
    %29 = vector.shape_cast %28 : vector<1x8x8xi1> to vector<1x8x8xi1>
    %30 = vector.broadcast %29 : vector<1x8x8xi1> to vector<4x8x8xi1>
    %31 = vector.broadcast %cst_12 : f32 to vector<4x8x8xf32>
    %32 = arith.select %30, %25, %31 : vector<4x8x8xi1>, vector<4x8x8xf32>
    %cst_13 = arith.constant dense<0xFF800000> : vector<4x8xf32>
    %33 = vector.multi_reduction <maximumf>, %32, %cst_13 [2] : vector<4x8x8xf32> to vector<4x8xf32>
    %34 = vector.shape_cast %33 : vector<4x8xf32> to vector<4x8x1xf32>
    %35 = vector.broadcast %34 : vector<4x8x1xf32> to vector<4x8x8xf32>
    %36 = arith.subf %32, %35 : vector<4x8x8xf32>
    %37 = math.exp %36 : vector<4x8x8xf32>
    %cst_14 = arith.constant dense<0.000000e+00> : vector<4x8xf32>
    %38 = vector.multi_reduction <add>, %37, %cst_14 [2] : vector<4x8x8xf32> to vector<4x8xf32>
    %39 = vector.shape_cast %38 : vector<4x8xf32> to vector<4x8x1xf32>
    %40 = tpu.reciprocal %39 {approx = true} : vector<4x8x1xf32> -> vector<4x8x1xf32>
    %41 = vector.broadcast %40 : vector<4x8x1xf32> to vector<4x8x8xf32>
    %42 = arith.mulf %37, %41 : vector<4x8x8xf32>
    %43 = arith.truncf %42 : vector<4x8x8xf32> to vector<4x8x8xbf16>
    "tpu.trace_start"() <{level = 10 : i32, message = "hqk,hkd->hqd"}> : () -> ()
    %cst_15 = arith.constant dense<0.000000e+00> : vector<4x8x8xf32>
    %44 = tpu.matmul %43, %22, %cst_15 {dimension_numbers = #tpu.dot_dimension_numbers<[2], [1], [1], [2], [0, 0, 0, 1, 1, 2], [0], [0]>} : vector<4x8x8xbf16>, vector<4x8x8xbf16>, vector<4x8x8xf32> -> vector<4x8x8xf32>
    "tpu.trace_stop"() : () -> ()
    %45 = tpu.transpose %44, [1, 0, 2] : vector<4x8x8xf32> -> vector<8x4x8xf32>
    %46 = vector.shape_cast %45 : vector<8x4x8xf32> to vector<8x32xf32>
    %47 = arith.truncf %46 : vector<8x32xf32> to vector<8x32xbf16>
    %c0_16 = arith.constant 0 : index
    %c0_17 = arith.constant 0 : index
    %48 = vector.load %arg5[%c0_16, %c0_17] : memref<32x32xf32, #tpu.memory_space<vmem>>, vector<32x32xf32>
    %49 = arith.truncf %48 : vector<32x32xf32> to vector<32x32xbf16>
    %cst_18 = arith.constant dense<0.000000e+00> : vector<8x32xf32>
    %50 = tpu.matmul %47, %49, %cst_18 {dimension_numbers = #tpu.dot_dimension_numbers<[1], [0], [0], [1], [0, 0, 1, 1], [], []>} : vector<8x32xbf16>, vector<32x32xbf16>, vector<8x32xf32> -> vector<8x32xf32>
    %c0_19 = arith.constant 0 : index
    %c0_20 = arith.constant 0 : index
    %51 = vector.load %arg6[%c0_19, %c0_20] : memref<1x32xf32, #tpu.memory_space<vmem>>, vector<1x32xf32>
    %52 = vector.broadcast %51 : vector<1x32xf32> to vector<8x32xf32>
    %53 = arith.addf %50, %52 : vector<8x32xf32>
    %c0_21 = arith.constant 0 : index
    %c0_22 = arith.constant 0 : index
    %c0_23 = arith.constant 0 : index
    %54 = vector.load %arg7[%c0_21, %c0_22, %c0_23] : memref<1x8x32xf32, #tpu.memory_space<vmem>>, vector<1x8x32xf32>
    %55 = vector.shape_cast %54 : vector<1x8x32xf32> to vector<8x32xf32>
    %56 = vector.shape_cast %53 : vector<8x32xf32> to vector<1x8x32xf32>
    tpu.vector_store %arg7[%c0_21, %c0_22, %c0_23], %56 {strides = array<i32>} : memref<1x8x32xf32, #tpu.memory_space<vmem>>, vector<1x8x32xf32>,
    return
  }
  func.func @transform_0(%arg0: i32) -> (i32, i32, i32) {
    %c0_i32 = arith.constant 0 : i32
    %c0_i32_0 = arith.constant 0 : i32
    %c0_i32_1 = arith.constant 0 : i32
    return %arg0, %c0_i32, %c0_i32_0 : i32, i32, i32
  }
  func.func @transform_1(%arg0: i32) -> (i32, i32, i32) {
    %c0_i32 = arith.constant 0 : i32
    %c0_i32_0 = arith.constant 0 : i32
    %c0_i32_1 = arith.constant 0 : i32
    return %arg0, %c0_i32, %c0_i32_0 : i32, i32, i32
  }
  func.func @transform_2(%arg0: i32) -> (i32, i32) {
    %c0_i32 = arith.constant 0 : i32
    %c0_i32_0 = arith.constant 0 : i32
    %c0_i32_1 = arith.constant 0 : i32
    return %c0_i32, %c0_i32_0 : i32, i32
  }
  func.func @transform_3(%arg0: i32) -> (i32, i32) {
    %c0_i32 = arith.constant 0 : i32
    %c0_i32_0 = arith.constant 0 : i32
    %c0_i32_1 = arith.constant 0 : i32
    return %c0_i32, %c0_i32_0 : i32, i32
  }
  func.func @transform_4(%arg0: i32) -> (i32, i32) {
    %c0_i32 = arith.constant 0 : i32
    %c0_i32_0 = arith.constant 0 : i32
    %c0_i32_1 = arith.constant 0 : i32
    return %c0_i32, %c0_i32_0 : i32, i32
  }
  func.func @transform_5(%arg0: i32) -> (i32, i32) {
    %c0_i32 = arith.constant 0 : i32
    %c0_i32_0 = arith.constant 0 : i32
    %c0_i32_1 = arith.constant 0 : i32
    return %c0_i32, %c0_i32_0 : i32, i32
  }
  func.func @transform_6(%arg0: i32) -> (i32, i32, i32) {
    %c0_i32 = arith.constant 0 : i32
    %c0_i32_0 = arith.constant 0 : i32
    %c0_i32_1 = arith.constant 0 : i32
    return %arg0, %c0_i32, %c0_i32_0 : i32, i32, i32
  }
}

</mosaic_0001>

<bundles_post_ra>
// kernel: tpu_custom_call.1
= control target key start
LH: loop header
LB: loop body
LE: loop exit
PB: predicated region body
PF: predicated region fallthrough
CT: control target
= control target key end

     0   :  { %s2548_s0 = inlined_call_operand.hbm [shape: f32[2,8,32], index: 0, kind: input, shape index: {}]   ;;  %s2549_s1 = inlined_call_operand.hbm [shape: f32[2,8,8], index: 1, kind: input, shape index: {}]   ;;  %s2550_s2 = inlined_call_operand.hbm [shape: f32[32,96], index: 2, kind: input, shape index: {}]   ;;  %s2551_s3 = inlined_call_operand.vmem [shape: f32[1,96], index: 3, kind: input, shape index: {}]   ;;  %s2552_s4 = inlined_call_operand.hbm [shape: f32[32,32], index: 4, kind: input, shape index: {}]   ;;  %s2553_s5 = inlined_call_operand.vmem [shape: f32[1,32], index: 5, kind: input, shape index: {}]   ;;  %s2554_s6 = inlined_call_operand.hbm [shape: f32[2,8,32], index: 6, kind: output, shape index: {}]  }
   0x1   :  { %2559 = sst [smem:[#allocation17_spill]] %s2550_s2 }
   0x2   :  { %2560 = sst [smem:[#allocation18_spill]] %s2552_s4 }
   0x3   :  { %11 = vsyncpa [#allocation3], 0 }
   0x4   :  { %13 = vsyncpa [#allocation3 + $0x1], 0 }
   0x5   :  { %14 = vsyncpa [#allocation6], 0 }
   0x6   :  { %16 = vsyncpa [#allocation6 + $0x1], 0 }
   0x7   :  { %17 = vsyncpa [#allocation9], 0 }
   0x8   :  { %18 = vsyncpa [#allocation4], 0 }
   0x9   :  { %20 = vsyncpa [#allocation4 + $0x1], 0  ;;  %s2091_s21 = smov 0   ;;  %s2093_s22 = smov 0  }
   0xa   :  { %s2095_s23 = smov 0   ;;  %s2097_s24 = smov 0  }
   0xb LB: > { %s2112_s25 = sadd.s32 4294967295, %s2035_s24   ;;  %s1614_s26 = sadd.s32 4294967294, %s2035_s24   ;;  %s2035_s24 = sphi %s2097_s24, %s2584_s24   ;;  %s2031_s23 = sphi %s2095_s23, %s2583_s23   ;;  %s2027_s22 = sphi %s2093_s22, %s2582_s22   ;;  %s2023_s21 = sphi %s2091_s21, %s2581_s21  }
   0xc   : > { %p46_p0 = scmp.ne.s32.totalorder %s2027_s22, %s2023_s21  ;;  %p2555_p1 = scmp.eq.s32.totalorder %s2112_s25, 0 }
   0xd   : > { %p186_p3 = scmp.eq.s32.totalorder %s1614_s26, 1  ;;  %p1615_p5 = scmp.ge.s32.totalorder %s2035_s24, 1 }
   0xe   : > { %p2121_p4 = por %p2555_p1, %p46_p0  ;;  %p193_p7 = scmp.lt.s32.totalorder %s2035_s24, 3 }
   0xf   : > { %p2126_p6 = por %p186_p3, %p46_p0  ;;  %s2037_s30 = smov [#allocation7]  }
  0x10   : > { %s2561_s27 = scalar_select %p2121_p4, 1, 0 }
  0x11   : > { %s2562_s28 = scalar_select %p2126_p6, 1, 0 }
  0x12   : > { %p2131_p8 = pnand %p1615_p5, %p193_p7  ;;  %s205_s7 = sshll.u32 %s2037_s30, 4  ;;  %s2135_s7 = int_to_ptr.vmem [resolvable:$true] %s205_s7 }
  0x13   : > { %s2038_s9 = smov [#allocation8]   ;;  %s2565_s2 = sld [smem:[#allocation17_spill]] }
  0x14   : > { %s2563_s29 = scalar_select %p2131_p8, 1, 0 }
  0x15   : > { %p1753_p9 = pneg %p2131_p8  ;;  %s221_s10 = sshll.u32 %s2038_s9, 4  ;;  %s2146_s10 = int_to_ptr.vmem [resolvable:$true] %s221_s10 }
  0x17   : > { %p2142_p11 = pnand %p1753_p9, %p2555_p1 }
  0x19   : > { %s1841_s13 = scalar_lea.hbm %s2565_s2, 512  ;;  %p1843_p13 = pneg %p2142_p11 }
  0x1a   : > { %p1842_p12 = scmp.ne.s32.totalorder %s2565_s2, %s1841_s13  ;;  %p1848_p5 = scmp.lt.u32.totalorder %s1841_s13, %s2565_s2 }
  0x1c   : > { %p1844_p0 = pnand %p1843_p13, %p1842_p12 }
  0x1e   : > { %p1845_p3 = pneg %p1844_p0 }
  0x20   : > { %p1850_p7 = pnand %p1848_p5, %p1845_p3 }
  0x22   : > { %1853 = shalt.err (!%p1850_p7)
}
  0x23   : > { %s1854_s18 = scalar_lea.vmem %s2135_s7, 512  ;;  %p1862_p2 = scmp.lt.s32.totalorder %s2135_s7, %s2135_s7 }
  0x24   : > { %p1855_p9 = scmp.ne.s32.totalorder %s2135_s7, %s1854_s18  ;;  %p1863_p12 = scmp.lt.s32.totalorder %s1854_s18, %s1854_s18 }
  0x26   : > { %p1857_p10 = pnand %p1855_p9, %p1843_p13  ;;  %p1864_p0 = por %p1863_p12, %p1862_p2 }
  0x28   : > { %p1858_p1 = pneg %p1857_p10 }
  0x2a   : > { %p1865_p6 = pnand %p1864_p0, %p1858_p1 }
  0x2c   : > { %1868 = shalt.err (!%p1865_p6)
}
  0x2d   : > { %s2039_s19 = smov 128   ;;  %s2040_s20 = smov 8  }
  0x2e   : > { %1756 = dma.hbm_to_vmem [thread:$0]  (!%p2142_p11), %s2565_s2, 512, %s2135_s7, [#allocation6], %s2039_s19, %s2039_s19, %s2040_s20  }
  0x2f   : > { %s2566_s4 = sld [smem:[#allocation18_spill]] }
  0x35   : > { %s1869_s12 = scalar_lea.hbm %s2566_s4, 512 }
  0x36   : > { %p1870_p2 = scmp.ne.s32.totalorder %s2566_s4, %s1869_s12  ;;  %p1876_p10 = scmp.lt.u32.totalorder %s1869_s12, %s2566_s4 }
  0x38   : > { %p1872_p1 = pnand %p1870_p2, %p1843_p13 }
  0x3a   : > { %p1873_p6 = pneg %p1872_p1 }
  0x3c   : > { %p1878_p3 = pnand %p1876_p10, %p1873_p6 }
  0x3e   : > { %1881 = shalt.err (!%p1878_p3)
}
  0x3f   : > { %s1882_s7 = scalar_lea.vmem %s2146_s10, 512  ;;  %p1890_p12 = scmp.lt.s32.totalorder %s2146_s10, %s2146_s10 }
  0x40   : > { %p1883_p5 = scmp.ne.s32.totalorder %s2146_s10, %s1882_s7  ;;  %p1891_p0 = scmp.lt.s32.totalorder %s1882_s7, %s1882_s7 }
  0x42   : > { %p1885_p7 = pnand %p1883_p5, %p1843_p13  ;;  %p1892_p2 = por %p1891_p0, %p1890_p12 }
  0x44   : > { %p1886_p9 = pneg %p1885_p7 }
  0x46   : > { %p1893_p1 = pnand %p1892_p2, %p1886_p9 }
  0x48   : > { %1896 = shalt.err (!%p1893_p1)
}
  0x49   : > { %1759 = dma.hbm_to_vmem [thread:$0]  (!%p2142_p11), %s2566_s4, 512, %s2146_s10, [#allocation9], %s2039_s19, %s2039_s19, %s2040_s20  }
  0x4a   : > { %s2201_s26 = sadd.s32 1, %s2035_s24   ;;  %s33_s8 = sadd.s32 1, %s2031_s23 }
  0x4b   : > { %s30_s30 = ssub.s32 %s2035_s24, %s2201_s26  ;;  %p40_p13 = scmp.ne.s32.totalorder %s2031_s23, %s2027_s22 }
  0x4c   : > { %p31_p6 = scmp.eq.s32.totalorder %s30_s30, 0  ;;  %p41_p10 = scmp.eq.s32.totalorder %s2035_s24, 0 }
  0x4d   : > { %p2567_p3 = scmp.eq.s32.totalorder %s2112_s25, 1  ;;  %p1773_p7 = scmp.lt.s32.totalorder %s2035_s24, 2 }
  0x4e   : > { %s2217_s11 = scalar_select %p31_p6, %s2031_s23, %s33_s8  }
  0x4f   : > { %p2211_p5 = por %p2567_p3, %p40_p13  ;;  %p42_p9 = por %p41_p10, %p40_p13 }
  0x50   : > { %2569 = sst [smem:[#allocation16_spill]] %s2217_s11  ;;  %s238_s12 = sand.u32 1, %s2031_s23  }
  0x51   : > { %s2568_s9 = scalar_select %p2211_p5, 1, 0 }
  0x52   : > { %s2220_s10 = sshll.u32 %s238_s12, 3  ;;  %s1620_s19 = sshll.u32 %s2035_s24, 7 }
  0x53   : > { %s2226_s14 = scalar_lea.hbm %s2548_s0, %s1620_s19  ;;  %s242_s15 = scalar_lea.vmem [#allocation2], %s2220_s10 }
  0x54   : > { %s249_s16 = sshll.u32 %s242_s15, 4  ;;  %p2231_p11 = pnand %p1773_p7, %p42_p9  ;;  %s2229_s16 = int_to_ptr.vmem [resolvable:$true] %s249_s16 }
  0x55   : > { %s2238_s8 = scalar_lea.hbm %s2549_s1, %s1620_s19  ;;  %s256_s30 = sand.u32 1, %s2035_s24  }
  0x56   : > { %s239_s20 = scalar_lea.sflag [#allocation3], %s238_s12  ;;  %s1897_s13 = scalar_lea.hbm %s2226_s14, 128 }
  0x57   : > { %p1898_p12 = scmp.ne.s32.totalorder %s2226_s14, %s1897_s13  ;;  %p1899_p0 = pneg %p2231_p11 }
  0x58   : > { %s1902_s4 = scalar_lea.hbm %s2548_s0, 256  ;;  %p1903_p13 = scmp.lt.u32.totalorder %s2226_s14, %s2548_s0 }
  0x59   : > { %p1900_p2 = pnand %p1899_p0, %p1898_p12  ;;  %p1904_p6 = scmp.lt.u32.totalorder %s1902_s4, %s1897_s13 }
  0x5a   : > { %p1906_p3 = scmp.lt.u32.totalorder %s1897_s13, %s2226_s14 }
  0x5b   : > { %p1901_p1 = pneg %p1900_p2  ;;  %p1905_p10 = por %p1904_p6, %p1903_p13 }
  0x5d   : > { %p1907_p7 = por %p1906_p3, %p1905_p10 }
  0x5f   : > { %p1908_p9 = pnand %p1907_p7, %p1901_p1 }
  0x61   : > { %1911 = shalt.err (!%p1908_p9)
}
  0x62   : > { %s1912_s12 = scalar_lea.vmem %s2229_s16, 128  ;;  %s2041_s2 = smov [#allocation2]  }
  0x63   : > { %p1913_p12 = scmp.ne.s32.totalorder %s2229_s16, %s1912_s12  ;;  %s1917_s19 = sshll.u32 %s2041_s2, 4  ;;  %s1918_s19 = int_to_ptr.vmem [resolvable:$false] %s1917_s19 }
  0x64   : > { %s1919_s11 = scalar_lea.vmem %s1918_s19, 256  ;;  %p1920_p4 = scmp.lt.s32.totalorder %s2229_s16, %s1918_s19 }
  0x65   : > { %p1915_p2 = pnand %p1913_p12, %p1899_p0  ;;  %p1921_p13 = scmp.lt.s32.totalorder %s1919_s11, %s1912_s12 }
  0x67   : > { %p1916_p5 = pneg %p1915_p2  ;;  %p1922_p6 = por %p1921_p13, %p1920_p4 }
  0x69   : > { %p1923_p10 = pnand %p1922_p6, %p1916_p5 }
  0x6b   : > { %1926 = shalt.err (!%p1923_p10)
}
  0x6c   : > { %1763 = dma.hbm_to_vmem [thread:$0]  (!%p2231_p11), %s2226_s14, 128, %s2229_s16, %s239_s20  }
  0x6d   : > { %s260_s4 = scalar_lea.vmem [#allocation5], %s2220_s10  ;;  %s257_s13 = scalar_lea.sflag [#allocation6], %s256_s30 }
  0x6e   : > { %s267_s18 = sshll.u32 %s260_s4, 4  ;;  %s1927_s15 = scalar_lea.hbm %s2238_s8, 128  ;;  %s268_s18 = int_to_ptr.vmem [resolvable:$true] %s267_s18 }
  0x6f   : > { %p1928_p4 = scmp.ne.s32.totalorder %s2238_s8, %s1927_s15  ;;  %s1932_s2 = scalar_lea.hbm %s2549_s1, 256 }
  0x70   : > { %p1933_p3 = scmp.lt.u32.totalorder %s2238_s8, %s2549_s1  ;;  %p1934_p7 = scmp.lt.u32.totalorder %s1932_s2, %s1927_s15 }
  0x71   : > { %p1930_p5 = pnand %p1928_p4, %p1899_p0  ;;  %p1936_p12 = scmp.lt.u32.totalorder %s1927_s15, %s2238_s8 }
  0x72   : > { %p1935_p9 = por %p1934_p7, %p1933_p3 }
  0x73   : > { %p1931_p1 = pneg %p1930_p5 }
  0x74   : > { %p1937_p2 = por %p1936_p12, %p1935_p9 }
  0x76   : > { %p1938_p13 = pnand %p1937_p2, %p1931_p1 }
  0x78   : > { %1941 = shalt.err (!%p1938_p13)
}
  0x79   : > { %s1942_s10 = scalar_lea.vmem %s268_s18, 128  ;;  %s2042_s14 = smov [#allocation5]  }
  0x7a   : > { %p1943_p6 = scmp.ne.s32.totalorder %s268_s18, %s1942_s10  ;;  %s1947_s16 = sshll.u32 %s2042_s14, 4  ;;  %s1948_s16 = int_to_ptr.vmem [resolvable:$false] %s1947_s16 }
  0x7b   : > { %s1949_s30 = scalar_lea.vmem %s1948_s16, 256  ;;  %p1950_p5 = scmp.lt.s32.totalorder %s268_s18, %s1948_s16 }
  0x7c   : > { %p1945_p10 = pnand %p1943_p6, %p1899_p0  ;;  %p1951_p8 = scmp.lt.s32.totalorder %s1949_s30, %s1942_s10 }
  0x7e   : > { %p1946_p4 = pneg %p1945_p10  ;;  %p1952_p3 = por %p1951_p8, %p1950_p5 }
  0x80   : > { %p1953_p7 = pnand %p1952_p3, %p1946_p4 }
  0x82   : > { %1956 = shalt.err (!%p1953_p7)
}
  0x83   : > { %1766 = dma.hbm_to_vmem [thread:$0]  (!%p2231_p11), %s2238_s8, 128, %s268_s18, %s257_s13  }
  0x84   : > { %p2571_p1 = scmp.ne.s32.totalorder %s2563_s29, 0 }
  0x85   : > { %s2291_s20 = sand.u32 (!%p2571_p1), 1, %s2027_s22   ;;  %p2572_p8 = scmp.ne.s32.totalorder (!%p2571_p1), %s2561_s27, 0 }
  0x86   : > { %276 = sbr.rel (%p2571_p1) target bundleno = 1803 (0x70b), region = 44  ;;  %s2294_s4 = sshll.u32 (!%p2571_p1), %s2291_s20, 3 }
  0x87   : > { %s279_s15 = scalar_lea.sflag (!%p2571_p1), [#allocation3], %s2291_s20  ;;  %s282_s17 = scalar_lea.vmem (!%p2571_p1), [#allocation2], %s2294_s4 }
  0x8d   : > { %2002 = dma.done.wait (%p2572_p8), %s279_s15, 128  }
  0x8e   : > { %2004 = vsyncadd (%p2572_p8), %s279_s15, 4294967168  ;;  %s287_s29 = sand.u32 1, %s2112_s25   ;;  %s291_s8 = scalar_lea.vmem [#allocation5], %s2294_s4 }
  0x8f   : > { %s288_s7 = scalar_lea.sflag [#allocation6], %s287_s29 }
  0x90   : > { %2006 = dma.done.wait (%p2572_p8), %s288_s7, 128  }
  0x91   : > { %2008 = vsyncadd (%p2572_p8), %s288_s7, 4294967168  ;;  %p2573_p11 = scmp.eq.s32.totalorder %s2112_s25, 0 }
  0x93   : > { %2010 = dma.done.wait (%p2573_p11), [#allocation6], 512   ;;  %p2574_p0 = pmov %p2573_p11 }
  0x95   : > { %2012 = vsyncadd (%p2574_p0), [#allocation6], 4294966784  ;;  %p2575_p9 = pmov %p2574_p0 }
  0x96   : > { %p2576_p12 = pmov %p2574_p0 }
  0x97   : > { %2014 = dma.done.wait (%p2575_p9), [#allocation9], 512  }
  0x98   : > { %2016 = vsyncadd (%p2576_p12), [#allocation9], 4294966784  ;;  %v2043_v0 = vmov 0.0   ;;  %vm2044_vm0 = vmmov 0   ;;  %v337_v1 = vld [vmem:[#allocation7] sm:$0xff]  ;;  %v338_v2 = vld [vmem:[#allocation7 + $0x8] sm:$0xff]  ;;  %v409_v20 = vlaneseq }
  0x99   : > { %1675 = vmatprep.subr.bf16.mxu0 %v2043_v0  ;;  %1679 = vmatprep.mubr.msk.bf16.mxu0 %vm2044_vm0, %v2043_v0  ;;  %v339_v3 = vld [vmem:[#allocation7 + $0x10] sm:$0xff]  ;;  %v341_v4 = vpack.c.bf16 %v338_v2, %v337_v1  ;;  %v340_v5 = vld [vmem:[#allocation7 + $0x18] sm:$0xff]  ;;  %v335_v7 = vld [vmem:[%s282_s17] sm:$0xff]  ;;  %vm350_vm1 = vcmask 261120   ;;  %s2045_s13 = smov 104   ;;  %s2046_s12 = smov 120  }
  0x9a   : > { %1683 = vmatprep.subr.bf16.mxu1 %v2043_v0  ;;  %1685 = vmatprep.mubr.msk.bf16.mxu1 %vm2044_vm0, %v2043_v0  ;;  %v342_v6 = vpack.c.bf16 %v340_v5, %v339_v3  ;;  %v336_v8 = vpack.c.bf16 %v335_v7, %v335_v7  ;;  %v1629_v9 = vld [vmem:[%s2551_s3] ss:$0 sm:$0xff]  ;;  %s2047_s2 = smov 96   ;;  %s2048_s19 = smov 112   ;;  %v2049_v18 = vmov 1983009808  }
  0x9b   : > { %1676 = vmatpush3.bf16.msra.mxu0 %v341_v4  ;;  %v407_v19 = vunpack.c.l.s4 %v2049_v18  ;;  %v410_v22 = vshrl.u32 %v409_v20, 7  ;;  %v2050_v23 = vmov 1934713408   ;;  %vm848_vm2 = vcmask 64512   ;;  %s2051_s11 = smov 64   ;;  %s2052_s10 = smov 16  }
  0x9c   : > { %1677 = vmatprep.subr.bf16.mxu0 %v2043_v0  ;;  %v439_v24 = vunpack.c.l.s4 %v2050_v23  ;;  %vm1095_vm4 = vcmask 1043456   ;;  %s2053_s14 = smov 8   ;;  %s2054_s16 = smov 24   ;;  %vm1426_vm5 = vcmask 130048   ;;  %vm1428_vm6 = vcmask 195584  }
  0x9d   : > { %v408_v21 = vunpack.c.0.s8 %v407_v19  ;;  %s1650_s17 = sshll.u32 %s2112_s25, 7  ;;  %s332_s29 = scalar_lea.vmem [#allocation10], %s2294_s4 }
  0x9e   : > { %v440_v30 = vunpack.c.0.s8 %v439_v24  ;;  %s1502_s7 = sshll.u32 %s332_s29, 4  ;;  %s2503_s18 = scalar_lea.hbm %s2554_s6, %s1650_s17  ;;  %s2505_s7 = int_to_ptr.vmem [resolvable:$true] %s1502_s7 }
  0x9f   : > { %1678 = vmatpush3.bf16.msra.mxu0 %v342_v6  ;;  %v2349_v27 = vsub.s32 %v408_v21, %v410_v22  ;;  %s1489_s25 = scalar_lea.sflag [#allocation4], %s2291_s20  ;;  %s1957_s4 = scalar_lea.vmem %s2505_s7, 128 }
  0xa0   : > { %1689 = vmatprep.subr.bf16.mxu0 %v2043_v0  ;;  %v2359_v37 = vsub.s32 %v440_v30, %v410_v22  ;;  %p1958_p2 = scmp.ne.s32.totalorder %s2505_s7, %s1957_s4  ;;  %p2577_p13 = scmp.ne.s32.totalorder %s2568_s9, 0 }
  0xa2   : > { %1680 = vmatmul.mubr.msk.bf16.vlgmr.msra.gmra.mrb[0].mxu0 %vm350_vm1, %v336_v8  ;;  %p1959_p6 = pnand %p1958_p2, %p2577_p13 }
  0xa3   : > { %1691 = vmatprep.mubr.msk.bf16.mxu0 %vm2044_vm0, %v2043_v0 }
  0xa4   : > { %p1960_p10 = pneg %p1959_p6 }
 0x175   : > { %v388_v10 = vpop.f32.mrb[0].mxu0 }
 0x176   : > { %v2330_v11 = vadd.f32 %v1629_v9, %v388_v10  ;;  %v1681_v12 = vpop.f32.mrb[1].mxu0 }
 0x177   : > { %v391_v13 = vpop.f32.mrb[2].mxu0 }
 0x178   : > { %401 = vrot.lane.b32.xlu1 %v2330_v11, %s2045_s13  ;;  %395 = vrot.lane.b32.xlu0 %v2330_v11, %s2046_s12  ;;  %v1682_v14 = vpop.f32.mrb[3].mxu0  ;;  %s2055_s13 = smov [#allocation10]  }
 0x179   : > { %s1961_s12 = sshll.u32 %s2055_s13, 4  ;;  %s1962_s12 = int_to_ptr.vmem [resolvable:$false] %s1961_s12 }
 0x17a   : > { %p1964_p4 = scmp.lt.s32.totalorder %s2505_s7, %s1962_s12 }
 0x17c   : > { %544 = vrot.lane.b32.xlu1 %v2330_v11, %s2047_s2  ;;  %398 = vrot.lane.b32.xlu0 %v2330_v11, %s2048_s19 }
 0x1ea   : > { %v2336_v15 = vpop.permute.xlu0 %395  ;;  %v2339_v16 = vpop.permute.xlu1 %401 }
 0x1eb   : > { %546 = vrot.lane.b32.xlu0 %v2336_v15, %s2047_s2  ;;  %v420_v28 = vcombine.low %v2336_v15, %v2339_v16  ;;  %v421_v29 = vcombine.high %v2336_v15, %v2339_v16 }
 0x1ed   : > { %v428_v33 = vrot.slane %v420_v28, %v2349_v27  ;;  %v435_v34 = vrot.slane %v421_v29, %v2349_v27 }
 0x1ee   : > { %v2341_v17 = vpop.permute.xlu0 %398  ;;  %v545_v35 = vpop.permute.xlu1 %544 }
 0x1ef   : > { %550 = vrot.lane.b32.xlu0 %v2339_v16, %s2047_s2  ;;  %548 = vrot.lane.b32.xlu1 %v2341_v17, %s2047_s2  ;;  %v404_v25 = vcombine.low %v2330_v11, %v2341_v17  ;;  %v405_v26 = vcombine.high %v2330_v11, %v2341_v17  ;;  %s1963_s2 = scalar_lea.vmem %s1962_s12, 256 }
 0x1f0   : > { %p1965_p5 = scmp.lt.s32.totalorder %s1963_s2, %s1957_s4 }
 0x1f1   : > { %v412_v31 = vrot.slane %v404_v25, %v2349_v27  ;;  %v419_v32 = vrot.slane %v405_v26, %v2349_v27 }
 0x1f2   : > { %p1966_p3 = por %p1965_p5, %p1964_p4 }
 0x1f3   : > { %v436_v38 = vcombine.low %v412_v31, %v428_v33  ;;  %v437_v39 = vcombine.high %v412_v31, %v428_v33  ;;  %v452_v40 = vcombine.low %v419_v32, %v435_v34  ;;  %v453_v41 = vcombine.high %v419_v32, %v435_v34 }
 0x1f4   : > { %p1967_p7 = pnand %p1966_p3, %p1960_p10 }
 0x1f5   : > { %v444_v48 = vrot.slane %v436_v38, %v2359_v37  ;;  %v451_v49 = vrot.slane %v437_v39, %v2359_v37  ;;  %v460_v50 = vrot.slane %v452_v40, %v2359_v37  ;;  %v467_v51 = vrot.slane %v453_v41, %v2359_v37 }
 0x1f7   : > { %v472_v60 = vcombine.low %v444_v48, %v451_v49  ;;  %v1631_v61 = vcombine.high %v444_v48, %v451_v49  ;;  %v488_v62 = vcombine.low %v460_v50, %v467_v51  ;;  %v1632_v63 = vcombine.high %v460_v50, %v467_v51 }
 0x1f9   : > { %v479_v9 = vrot.slane %v472_v60, %v2349_v27  ;;  %v487_v10 = vrot.slane %v1631_v61, %v2349_v27  ;;  %v495_v12 = vrot.slane %v488_v62, %v2349_v27  ;;  %v503_v13 = vrot.slane %v1632_v63, %v2349_v27 }
 0x1fb   : > { %v504_v28 = vcombine.low %v479_v9, %v487_v10  ;;  %v520_v29 = vcombine.low %v495_v12, %v503_v13 }
 0x1fd   : > { %v528_v38 = vrot.slane %v520_v29, %v2359_v37 }
 0x25d   : > { %v547_v36 = vpop.permute.xlu0 %546 }
 0x261   : > { %v549_v42 = vpop.permute.xlu1 %548  ;;  %v551_v43 = vpop.permute.xlu0 %550 }
 0x262   : > { %v556_v44 = vcombine.low %v545_v35, %v549_v42  ;;  %v557_v45 = vcombine.high %v545_v35, %v549_v42  ;;  %v572_v46 = vcombine.low %v547_v36, %v551_v43  ;;  %v573_v47 = vcombine.high %v547_v36, %v551_v43 }
 0x263   : > { %v512_v36 = vrot.slane %v504_v28, %v2359_v37  ;;  %v505_v43 = vcombine.high %v479_v9, %v487_v10 }
 0x264   : > { %v564_v52 = vrot.slane %v556_v44, %v2349_v27  ;;  %v571_v53 = vrot.slane %v557_v45, %v2349_v27  ;;  %v580_v54 = vrot.slane %v572_v46, %v2349_v27  ;;  %v587_v55 = vrot.slane %v573_v47, %v2349_v27 }
 0x265   : > { %v521_v44 = vcombine.high %v495_v12, %v503_v13  ;;  %v536_v45 = vcombine.low %v512_v36, %v528_v38  ;;  %v537_v46 = vcombine.high %v512_v36, %v528_v38  ;;  %v519_v51 = vrot.slane %v505_v43, %v2359_v37 }
 0x266   : > { %v588_v56 = vcombine.low %v564_v52, %v580_v54  ;;  %v589_v57 = vcombine.high %v564_v52, %v580_v54  ;;  %v604_v58 = vcombine.low %v571_v53, %v587_v55  ;;  %v605_v59 = vcombine.high %v571_v53, %v587_v55 }
 0x267   : > { %v540_v49 = vpack.c.bf16 %v536_v45, %v536_v45  ;;  %v541_v50 = vpack.c.bf16 %v537_v46, %v537_v46  ;;  %v535_v52 = vrot.slane %v521_v44, %v2359_v37 }
 0x268   : > { %v596_v1 = vrot.slane %v588_v56, %v2359_v37  ;;  %v603_v2 = vrot.slane %v589_v57, %v2359_v37  ;;  %v612_v3 = vrot.slane %v604_v58, %v2359_v37  ;;  %v619_v4 = vrot.slane %v605_v59, %v2359_v37  ;;  %v334_v59 = vld [vmem:[%s291_s8] sm:$0xff] }
 0x269   : > { %v538_v55 = vcombine.low %v519_v51, %v535_v52  ;;  %v539_v56 = vcombine.high %v519_v51, %v535_v52  ;;  %vm1037_vm3 = vcmp.ne.f32.partialorder %v334_v59, 0.0 }
 0x26a   : > { %v624_v5 = vcombine.low %v596_v1, %v603_v2  ;;  %v1633_v6 = vcombine.high %v596_v1, %v603_v2  ;;  %v640_v7 = vcombine.low %v612_v3, %v619_v4  ;;  %v1634_v8 = vcombine.high %v612_v3, %v619_v4 }
 0x26b   : > { %v542_v57 = vpack.c.bf16 %v538_v55, %v538_v55  ;;  %v543_v58 = vpack.c.bf16 %v539_v56, %v539_v56 }
 0x26c   : > { %v631_v14 = vrot.slane %v624_v5, %v2349_v27  ;;  %v639_v18 = vrot.slane %v1633_v6, %v2349_v27  ;;  %v647_v19 = vrot.slane %v640_v7, %v2349_v27  ;;  %v655_v20 = vrot.slane %v1634_v8, %v2349_v27 }
 0x26e   : > { %v656_v21 = vcombine.low %v631_v14, %v639_v18  ;;  %v672_v22 = vcombine.low %v647_v19, %v655_v20  ;;  %v657_v23 = vcombine.high %v631_v14, %v639_v18  ;;  %v673_v24 = vcombine.high %v647_v19, %v655_v20 }
 0x270   : > { %v664_v25 = vrot.slane %v656_v21, %v2359_v37  ;;  %v680_v26 = vrot.slane %v672_v22, %v2359_v37  ;;  %v671_v32 = vrot.slane %v657_v23, %v2359_v37  ;;  %v687_v33 = vrot.slane %v673_v24, %v2359_v37 }
 0x272   : > { %v688_v30 = vcombine.low %v664_v25, %v680_v26  ;;  %v689_v31 = vcombine.high %v664_v25, %v680_v26  ;;  %v690_v41 = vcombine.low %v671_v32, %v687_v33  ;;  %v691_v42 = vcombine.high %v671_v32, %v687_v33 }
 0x274   : > { %v692_v34 = vpack.c.bf16 %v688_v30, %v688_v30  ;;  %v693_v35 = vpack.c.bf16 %v689_v31, %v689_v31  ;;  %v694_v47 = vpack.c.bf16 %v690_v41, %v690_v41  ;;  %v695_v48 = vpack.c.bf16 %v691_v42, %v691_v42 }
 0x276   : > { %v853_v39 = vsel %vm848_vm2, %v692_v34, 0  ;;  %v899_v40 = vsel %vm848_vm2, %v693_v35, 0  ;;  %v945_v53 = vsel %vm848_vm2, %v694_v47, 0  ;;  %v991_v54 = vsel %vm848_vm2, %v695_v48, 0 }
 0x277   : > { %1684 = vmatpush3.bf16.xpose.msra.mxu1 %v853_v39  ;;  %1690 = vmatpush3.bf16.xpose.msra.mxu0 %v899_v40 }
 0x278   : > { %1695 = vmatprep.subr.bf16.mxu1 %v2043_v0  ;;  %1701 = vmatprep.subr.bf16.mxu0 %v2043_v0 }
 0x27e   : > { %1686 = vmatmul.mubr.msk.bf16.vlgmr.msra.gmra.mrb[0].mxu1 %vm848_vm2, %v540_v49  ;;  %1692 = vmatmul.mubr.msk.bf16.vlgmr.msra.gmra.mrb[4].mxu0 %vm848_vm2, %v541_v50 }
 0x27f   : > { %1696 = vmatpush3.bf16.xpose.msra.mxu1 %v945_v53  ;;  %1702 = vmatpush3.bf16.xpose.msra.mxu0 %v991_v54 }
 0x280   : > { %1697 = vmatprep.mubr.msk.bf16.mxu1 %vm2044_vm0, %v2043_v0  ;;  %1703 = vmatprep.mubr.msk.bf16.mxu0 %vm2044_vm0, %v2043_v0 }
 0x281   : > { %1707 = vmatprep.subr.bf16.mxu1 %v2043_v0  ;;  %1713 = vmatprep.subr.bf16.mxu0 %v2043_v0 }
 0x286   : > { %1698 = vmatmul.mubr.msk.bf16.vlgmr.msra.gmra.mrb[4].mxu1 %vm848_vm2, %v542_v57  ;;  %1704 = vmatmul.mubr.msk.bf16.vlgmr.msra.gmra.mrb[8].mxu0 %vm848_vm2, %v543_v58 }
 0x287   : > { %1709 = vmatprep.mubr.msk.bf16.mxu1 %vm2044_vm0, %v2043_v0  ;;  %1715 = vmatprep.mubr.msk.bf16.mxu0 %vm2044_vm0, %v2043_v0 }
 0x351   : > { %v889_v60 = vpop.f32.mrb[0].mxu1  ;;  %v935_v61 = vpop.f32.mrb[4].mxu0 }
 0x352   : > { %v1033_v62 = vmul.f32 0.35355338, %v889_v60  ;;  %v1034_v63 = vmul.f32 0.35355338, %v935_v61  ;;  %v1687_v1 = vpop.f32.mrb[1].mxu1  ;;  %v1693_v2 = vpop.f32.mrb[5].mxu0 }
 0x353   : > { %v892_v3 = vpop.f32.mrb[2].mxu1  ;;  %v938_v4 = vpop.f32.mrb[6].mxu0 }
 0x354   : > { %v1688_v5 = vpop.f32.mrb[3].mxu1  ;;  %v1694_v6 = vpop.f32.mrb[7].mxu0  ;;  %v1041_v7 = vsel %vm1037_vm3, %v1034_v63, -1e+10  ;;  %v1040_v8 = vsel %vm1037_vm3, %v1033_v62, -1e+10 }
 0x355   : > { %v1047_v9 = vsel %vm848_vm2, %v1041_v7, -inf  ;;  %v1044_v10 = vsel %vm848_vm2, %v1040_v8, -inf }
 0x356   : > { %1048 = vmax.xlane.f32.xlu0 %v1047_v9  ;;  %1045 = vmax.xlane.f32.xlu1 %v1044_v10 }
 0x359   : > { %v981_v12 = vpop.f32.mrb[4].mxu1  ;;  %v1027_v13 = vpop.f32.mrb[8].mxu0 }
 0x35a   : > { %v1035_v14 = vmul.f32 0.35355338, %v981_v12  ;;  %v1036_v18 = vmul.f32 0.35355338, %v1027_v13  ;;  %v1699_v19 = vpop.f32.mrb[5].mxu1  ;;  %v1705_v20 = vpop.f32.mrb[9].mxu0 }
 0x35b   : > { %v984_v21 = vpop.f32.mrb[6].mxu1  ;;  %v1030_v22 = vpop.f32.mrb[10].mxu0 }
 0x35c   : > { %v1700_v23 = vpop.f32.mrb[7].mxu1  ;;  %v1706_v24 = vpop.f32.mrb[11].mxu0  ;;  %v1042_v25 = vsel %vm1037_vm3, %v1035_v14, -1e+10  ;;  %v1043_v26 = vsel %vm1037_vm3, %v1036_v18, -1e+10 }
 0x35d   : > { %v1050_v28 = vsel %vm848_vm2, %v1042_v25, -inf  ;;  %v1053_v29 = vsel %vm848_vm2, %v1043_v26, -inf }
 0x35e   : > { %1051 = vmax.xlane.f32.xlu0 %v1050_v28  ;;  %1054 = vmax.xlane.f32.xlu1 %v1053_v29 }
 0x36f   : > { %698 = vrot.lane.b32.xlu1 %v2336_v15, %s2051_s11 }
 0x374   : > { %696 = vrot.lane.b32.xlu0 %v2330_v11, %s2051_s11 }
 0x3e3   : > { %v1049_v30 = vpop.xlane.xlu0 %1048  ;;  %v1046_v31 = vpop.xlane.xlu1 %1045 }
 0x3e4   : > { %v1057_v32 = vsub.f32 %v1041_v7, %v1049_v30  ;;  %v1056_v33 = vsub.f32 %v1040_v8, %v1046_v31 }
 0x3e6   : > { %v1062_v34 = vmul.f32 1.442695, %v1057_v32  ;;  %v1060_v35 = vmul.f32 1.442695, %v1056_v33 }
 0x3e8   : > { %1825 = vpow2.f32 %v1062_v34 }
 0x3e9   : > { %1827 = vpow2.f32 %v1060_v35 }
 0x3eb   : > { %v1052_v11 = vpop.xlane.xlu0 %1051  ;;  %v1055_v40 = vpop.xlane.xlu1 %1054 }
 0x3ec   : > { %v1058_v41 = vsub.f32 %v1042_v25, %v1052_v11  ;;  %v1059_v42 = vsub.f32 %v1043_v26, %v1055_v40 }
 0x3ee   : > { %v1064_v43 = vmul.f32 1.442695, %v1058_v41  ;;  %v1066_v44 = vmul.f32 1.442695, %v1059_v42 }
 0x3ef   : > { %v697_v48 = vpop.permute.xlu0 %696 }
 0x3f0   : > { %1829 = vpow2.f32 %v1064_v43 }
 0x3f1   : > { %1831 = vpow2.f32 %v1066_v44 }
 0x3f2   : > { %v2421_v36 = vpop.eup %1825 }
 0x3f3   : > { %v2423_v38 = vpop.eup %1827  ;;  %v1071_v39 = vsel %vm848_vm2, %v2421_v36, 0.0 }
 0x3f4   : > { %1072 = vadd.xlane.f32.xlu1 %v1071_v39  ;;  %v1068_v15 = vsel %vm848_vm2, %v2423_v38, 0.0 }
 0x3f5   : > { %1069 = vadd.xlane.f32.xlu0 %v1068_v15 }
 0x3fa   : > { %v2431_v45 = vpop.eup %1829 }
 0x3fb   : > { %v2433_v46 = vpop.eup %1831  ;;  %v1074_v47 = vsel %vm848_vm2, %v2431_v45, 0.0 }
 0x405   : > { %700 = vrot.lane.b32.xlu1 %v2341_v17, %s2051_s11  ;;  %v1077_v17 = vsel %vm848_vm2, %v2433_v46, 0.0 }
 0x40b   : > { %702 = vrot.lane.b32.xlu0 %v2339_v16, %s2051_s11  ;;  %v699_v16 = vpop.permute.xlu1 %698 }
 0x429   : > { %1075 = vadd.xlane.f32.xlu1 %v1074_v47 }
 0x42a   : > { %1078 = vadd.xlane.f32.xlu0 %v1077_v17 }
 0x481   : > { %v1073_v49 = vpop.xlane.xlu1 %1072 }
 0x482   : > { %v1070_v50 = vpop.xlane.xlu0 %1069  ;;  %1833 = vrcp.f32 %v1073_v49 }
 0x483   : > { %1835 = vrcp.f32 %v1070_v50 }
 0x485   : > { %v701_v51 = vpop.permute.xlu1 %700 }
 0x486   : > { %v703_v52 = vpop.permute.xlu0 %702  ;;  %v708_v53 = vcombine.low %v697_v48, %v701_v51  ;;  %v709_v54 = vcombine.high %v697_v48, %v701_v51 }
 0x487   : > { %v724_v55 = vcombine.low %v699_v16, %v703_v52  ;;  %v725_v56 = vcombine.high %v699_v16, %v703_v52 }
 0x488   : > { %v716_v57 = vrot.slane %v708_v53, %v2349_v27  ;;  %v723_v58 = vrot.slane %v709_v54, %v2349_v27 }
 0x489   : > { %v732_v59 = vrot.slane %v724_v55, %v2349_v27  ;;  %v739_v60 = vrot.slane %v725_v56, %v2349_v27 }
 0x48b   : > { %v740_v61 = vcombine.low %v716_v57, %v732_v59  ;;  %v741_v62 = vcombine.high %v716_v57, %v732_v59  ;;  %v756_v63 = vcombine.low %v723_v58, %v739_v60  ;;  %v757_v1 = vcombine.high %v723_v58, %v739_v60 }
 0x48c   : > { %v1834_v24 = vpop.eup %1833 }
 0x48d   : > { %v748_v2 = vrot.slane %v740_v61, %v2359_v37  ;;  %v755_v3 = vrot.slane %v741_v62, %v2359_v37  ;;  %v764_v4 = vrot.slane %v756_v63, %v2359_v37  ;;  %v771_v5 = vrot.slane %v757_v1, %v2359_v37  ;;  %v1836_v28 = vpop.eup %1835 }
 0x48e   : > { %v1084_v33 = vmul.f32 %v1836_v28, %v2423_v38  ;;  %v1085_v34 = vmul.f32 %v1834_v24, %v2421_v36  ;;  %v1434_v28 = vld [vmem:[#allocation8 + $0x18] sm:$0xff] }
 0x48f   : > { %v776_v6 = vcombine.low %v748_v2, %v755_v3  ;;  %v1635_v7 = vcombine.high %v748_v2, %v755_v3  ;;  %v792_v8 = vcombine.low %v764_v4, %v771_v5  ;;  %v1636_v9 = vcombine.high %v764_v4, %v771_v5 }
 0x490   : > { %v1088_v42 = vpack.c.bf16 %v1084_v33, %v1084_v33  ;;  %v1089_v43 = vpack.c.bf16 %v1085_v34, %v1085_v34 }
 0x491   : > { %v783_v10 = vrot.slane %v776_v6, %v2349_v27  ;;  %v791_v12 = vrot.slane %v1635_v7, %v2349_v27  ;;  %v799_v13 = vrot.slane %v792_v8, %v2349_v27  ;;  %v807_v14 = vrot.slane %v1636_v9, %v2349_v27 }
 0x493   : > { %v808_v18 = vcombine.low %v783_v10, %v791_v12  ;;  %v809_v19 = vcombine.high %v783_v10, %v791_v12  ;;  %v824_v20 = vcombine.low %v799_v13, %v807_v14  ;;  %v825_v21 = vcombine.high %v799_v13, %v807_v14  ;;  %v1431_v12 = vld [vmem:[#allocation8] sm:$0xff]  ;;  %v1432_v13 = vld [vmem:[#allocation8 + $0x8] sm:$0xff] }
 0x495   : > { %v816_v22 = vrot.slane %v808_v18, %v2359_v37  ;;  %v823_v23 = vrot.slane %v809_v19, %v2359_v37  ;;  %v832_v25 = vrot.slane %v824_v20, %v2359_v37  ;;  %v839_v26 = vrot.slane %v825_v21, %v2359_v37 }
 0x496   : > { %v1435_v21 = vpack.c.bf16 %v1432_v13, %v1431_v12 }
 0x497   : > { %v840_v29 = vcombine.low %v816_v22, %v832_v25  ;;  %v841_v30 = vcombine.high %v816_v22, %v832_v25  ;;  %v842_v31 = vcombine.low %v823_v23, %v839_v26  ;;  %v843_v32 = vcombine.high %v823_v23, %v839_v26  ;;  %v1433_v26 = vld [vmem:[#allocation8 + $0x10] sm:$0xff] }
 0x498   : > { %v1436_v33 = vpack.c.bf16 %v1434_v28, %v1433_v26 }
 0x499   : > { %v844_v35 = vpack.c.bf16 %v840_v29, %v840_v29  ;;  %v845_v39 = vpack.c.bf16 %v841_v30, %v841_v30  ;;  %v846_v40 = vpack.c.bf16 %v842_v31, %v842_v31  ;;  %v847_v41 = vpack.c.bf16 %v843_v32, %v843_v32 }
 0x49b   : > { %v1097_v15 = vsel %vm1095_vm4, %v844_v35, 0  ;;  %v1143_v11 = vsel %vm1095_vm4, %v845_v39, 0  ;;  %v1189_v36 = vsel %vm1095_vm4, %v846_v40, 0  ;;  %v1235_v38 = vsel %vm1095_vm4, %v847_v41, 0 }
 0x49c   : > { %1708 = vmatpush3.bf16.msra.mxu1 %v1097_v15  ;;  %1714 = vmatpush3.bf16.msra.mxu0 %v1143_v11 }
 0x49d   : > { %1719 = vmatprep.subr.bf16.mxu1 %v2043_v0  ;;  %1725 = vmatprep.subr.bf16.mxu0 %v2043_v0 }
 0x49f   : > { %1710 = vmatmul.mubr.msk.bf16.vlgmr.msra.gmra.mrb[8].mxu1 %vm848_vm2, %v1088_v42  ;;  %1716 = vmatmul.mubr.msk.bf16.vlgmr.msra.gmra.mrb[12].mxu0 %vm848_vm2, %v1089_v43 }
 0x4a0   : > { %1720 = vmatpush3.bf16.msra.mxu1 %v1189_v36  ;;  %1726 = vmatpush3.bf16.msra.mxu0 %v1235_v38 }
 0x4a1   : > { %1721 = vmatprep.mubr.msk.bf16.mxu1 %vm2044_vm0, %v2043_v0  ;;  %1727 = vmatprep.mubr.msk.bf16.mxu0 %vm2044_vm0, %v2043_v0 }
 0x4a2   : > { %1731 = vmatprep.subr.bf16.mxu1 %v2043_v0 }
 0x4b6   : > { %v1076_v44 = vpop.xlane.xlu1 %1075 }
 0x4b7   : > { %v1079_v47 = vpop.xlane.xlu0 %1078  ;;  %1837 = vrcp.f32 %v1076_v44 }
 0x4b8   : > { %1839 = vrcp.f32 %v1079_v47 }
 0x4c1   : > { %v1838_v17 = vpop.eup %1837 }
 0x4c2   : > { %v1840_v16 = vpop.eup %1839  ;;  %v1086_v48 = vmul.f32 %v1838_v17, %v2431_v45 }
 0x4c3   : > { %v1087_v49 = vmul.f32 %v1840_v16, %v2433_v46 }
 0x4c4   : > { %v1090_v50 = vpack.c.bf16 %v1086_v48, %v1086_v48 }
 0x4c5   : > { %v1091_v51 = vpack.c.bf16 %v1087_v49, %v1087_v49 }
 0x4c6   : > { %1722 = vmatmul.mubr.msk.bf16.vlgmr.msra.gmra.mrb[12].mxu1 %vm848_vm2, %v1090_v50 }
 0x4c7   : > { %1728 = vmatmul.mubr.msk.bf16.vlgmr.msra.gmra.mrb[16].mxu0 %vm848_vm2, %v1091_v51  ;;  %1735 = vmatprep.mubr.msk.bf16.mxu1 %vm2044_vm0, %v2043_v0 }
 0x4c8   : > { %1732 = vmatpush3.bf16.msra.mxu1 %v1435_v21 }
 0x4c9   : > { %1733 = vmatprep.subr.bf16.mxu1 %v2043_v0 }
 0x4cc   : > { %1734 = vmatpush3.bf16.msra.mxu1 %v1436_v33 }
 0x572   : > { %v1133_v52 = vpop.f32.mrb[8].mxu1  ;;  %v1179_v53 = vpop.f32.mrb[12].mxu0 }
 0x573   : > { %v1711_v54 = vpop.f32.mrb[9].mxu1  ;;  %v1717_v55 = vpop.f32.mrb[13].mxu0 }
 0x574   : > { %v1136_v56 = vpop.f32.mrb[10].mxu1  ;;  %v1182_v57 = vpop.f32.mrb[14].mxu0 }
 0x575   : > { %v1712_v58 = vpop.f32.mrb[11].mxu1  ;;  %v1718_v59 = vpop.f32.mrb[15].mxu0 }
 0x599   : > { %v1225_v45 = vpop.f32.mrb[12].mxu1 }
 0x59a   : > { %v1277_v60 = vcombine.low %v1133_v52, %v1225_v45  ;;  %v1278_v46 = vcombine.high %v1133_v52, %v1225_v45  ;;  %v1271_v61 = vpop.f32.mrb[16].mxu0  ;;  %v1723_v62 = vpop.f32.mrb[13].mxu1 }
 0x59b   : > { %v1293_v63 = vcombine.low %v1179_v53, %v1271_v61  ;;  %v1294_v1 = vcombine.high %v1179_v53, %v1271_v61  ;;  %v1729_v2 = vpop.f32.mrb[17].mxu0  ;;  %v1228_v3 = vpop.f32.mrb[14].mxu1  ;;  %v1647_v53 = vld [vmem:[%s2553_s5] ss:$0 sm:$0xff] }
 0x59c   : > { %v1285_v4 = vrot.slane %v1277_v60, %v2349_v27  ;;  %v1292_v5 = vrot.slane %v1278_v46, %v2349_v27  ;;  %v1274_v6 = vpop.f32.mrb[18].mxu0  ;;  %v1724_v7 = vpop.f32.mrb[15].mxu1 }
 0x59d   : > { %v1301_v8 = vrot.slane %v1293_v63, %v2349_v27  ;;  %v1308_v9 = vrot.slane %v1294_v1, %v2349_v27  ;;  %v1730_v10 = vpop.f32.mrb[19].mxu0 }
 0x59f   : > { %v1309_v14 = vcombine.low %v1285_v4, %v1301_v8  ;;  %v1310_v18 = vcombine.high %v1285_v4, %v1301_v8  ;;  %v1325_v19 = vcombine.low %v1292_v5, %v1308_v9  ;;  %v1326_v20 = vcombine.high %v1292_v5, %v1308_v9 }
 0x5a1   : > { %v1317_v22 = vrot.slane %v1309_v14, %v2359_v37  ;;  %v1324_v23 = vrot.slane %v1310_v18, %v2359_v37  ;;  %v1333_v24 = vrot.slane %v1325_v19, %v2359_v37  ;;  %v1340_v25 = vrot.slane %v1326_v20, %v2359_v37 }
 0x5a3   : > { %v1345_v29 = vcombine.low %v1317_v22, %v1324_v23  ;;  %v1645_v30 = vcombine.high %v1317_v22, %v1324_v23  ;;  %v1361_v31 = vcombine.low %v1333_v24, %v1340_v25  ;;  %v1646_v32 = vcombine.high %v1333_v24, %v1340_v25 }
 0x5a5   : > { %v1352_v34 = vrot.slane %v1345_v29, %v2349_v27  ;;  %v1360_v35 = vrot.slane %v1645_v30, %v2349_v27  ;;  %v1368_v39 = vrot.slane %v1361_v31, %v2349_v27  ;;  %v1376_v15 = vrot.slane %v1646_v32, %v2349_v27 }
 0x5a7   : > { %v1378_v11 = vcombine.high %v1352_v34, %v1360_v35  ;;  %v1394_v40 = vcombine.high %v1368_v39, %v1376_v15  ;;  %v1377_v41 = vcombine.low %v1352_v34, %v1360_v35  ;;  %v1393_v42 = vcombine.low %v1368_v39, %v1376_v15 }
 0x5a9   : > { %v1392_v43 = vrot.slane %v1378_v11, %v2359_v37  ;;  %v1408_v36 = vrot.slane %v1394_v40, %v2359_v37  ;;  %v1385_v0 = vrot.slane %v1377_v41, %v2359_v37  ;;  %v1401_v38 = vrot.slane %v1393_v42, %v2359_v37 }
 0x5ab   : > { %v1411_v44 = vcombine.low %v1392_v43, %v1408_v36  ;;  %v1410_v47 = vcombine.high %v1385_v0, %v1401_v38  ;;  %v1412_v17 = vcombine.high %v1392_v43, %v1408_v36  ;;  %v1409_v16 = vcombine.low %v1385_v0, %v1401_v38 }
 0x5ad   : > { %1418 = vrot.lane.b32.xlu1 %v1411_v44, %s2052_s10  ;;  %1414 = vrot.lane.b32.xlu0 %v1410_v47, %s2053_s14 }
 0x5b1   : > { %1422 = vrot.lane.b32.xlu1 %v1412_v17, %s2054_s16 }
 0x61f   : > { %v1419_v27 = vpop.permute.xlu1 %1418  ;;  %v1415_v48 = vpop.permute.xlu0 %1414 }
 0x620   : > { %v1425_v49 = vsel %vm848_vm2, %v1409_v16, %v1415_v48 }
 0x621   : > { %v1427_v37 = vsel %vm1426_vm5, %v1425_v49, %v1419_v27 }
 0x623   : > { %v1423_v50 = vpop.permute.xlu1 %1422 }
 0x624   : > { %v1429_v51 = vsel %vm1428_vm6, %v1427_v37, %v1423_v50 }
 0x625   : > { %v1430_v52 = vpack.c.bf16 %v1429_v51, %v1429_v51 }
 0x627   : > { %1736 = vmatmul.mubr.msk.bf16.vlgmr.msra.gmra.mrb[16].mxu1 %vm350_vm1, %v1430_v52 }
 0x6fa   : > { %v1481_v54 = vpop.f32.mrb[16].mxu1 }
 0x6fb   : > { %v1482_v55 = vadd.f32 %v1647_v53, %v1481_v54  ;;  %v1737_v56 = vpop.f32.mrb[17].mxu1 }
 0x6fc   : > { %v1484_v57 = vpop.f32.mrb[18].mxu1 }
 0x6fd   : > { %v1738_v58 = vpop.f32.mrb[19].mxu1  ;;  %1487 = vst.msk [vmem:[%s332_s29] sm:$0xff] %vm350_vm1, %v1482_v55 }
 0x6fe   : > { %1970 = shalt.err (!%p1967_p7)
}
 0x6ff   : > { %s1971_s20 = scalar_lea.hbm %s2503_s18, 128  ;;  %s1975_s10 = scalar_lea.hbm %s2554_s6, 256 }
 0x700   : > { %p1972_p1 = scmp.ne.s32.totalorder %s2503_s18, %s1971_s20  ;;  %p1976_p0 = scmp.lt.u32.totalorder %s2503_s18, %s2554_s6 }
 0x701   : > { %p1977_p9 = scmp.lt.u32.totalorder %s1975_s10, %s1971_s20  ;;  %p1979_p2 = scmp.lt.u32.totalorder %s1971_s20, %s2503_s18 }
 0x702   : > { %p1973_p8 = pnand %p1972_p1, %p2577_p13 }
 0x703   : > { %p1978_p12 = por %p1977_p9, %p1976_p0 }
 0x704   : > { %p1974_p11 = pneg %p1973_p8 }
 0x705   : > { %p1980_p6 = por %p1979_p2, %p1978_p12 }
 0x707   : > { %p1981_p10 = pnand %p1980_p6, %p1974_p11 }
 0x709   : > { %1984 = shalt.err (!%p1981_p10)
}
 0x70a   : > { %1751 = dma.vmem_to_hbm [thread:$0]  (%p2577_p13), %s2505_s7, 128, %s2503_s18, %s1489_s25  }
 0x70b PF: > { %s1514_s30 = sand.u32 1, %s2023_s21   ;;  %p2578_p4 = scmp.ne.s32.totalorder %s2562_s28, 0 }
 0x70c   : > { %p2579_p5 = scmp.ge.s32.totalorder %s2035_s24, 2  ;;  %s1515_s15 = scalar_lea.sflag [#allocation4], %s1514_s30 }
 0x70e   : > { %p1768_p3 = pnand %p2579_p5, %p2578_p4 }
 0x710   : > { %2018 = dma.done.wait (!%p1768_p3), %s1515_s15, 128  }
 0x711   : > { %2020 = vsyncadd (!%p1768_p3), %s1515_s15, 4294967168  ;;  %s2580_s17 = sld [smem:[#allocation16_spill]]  ;;  %p23_p7 = scmp.ge.s32.totalorder %s2201_s26, 4  }
 0x712   : > { %s2581_s21 = smov %s2027_s22  ;;  %s2582_s22 = smov %s2031_s23 }
 0x713   : > { %s2584_s24 = smov %s2201_s26  ;;  %25 = sbr.rel (!%p23_p7) target bundleno = 11 (0xb), region = 110 }
 0x717   : > { %s2583_s23 = smov %s2580_s17 }
 0x71a   :  { %1520 = vsyncpa [#allocation3], 1 }
 0x71b   :  { %1522 = vsyncpa [#allocation3 + $0x1], 1 }
 0x71c   :  { %1523 = vsyncpa [#allocation6], 1 }
 0x71d   :  { %1525 = vsyncpa [#allocation6 + $0x1], 1 }
 0x71e   :  { %1526 = vsyncpa [#allocation9], 1 }
 0x71f   :  { %1527 = vsyncpa [#allocation4], 1 }
 0x720   :  { %1529 = vsyncpa [#allocation4 + $0x1], 1 }

</bundles_post_ra>
